<compile_context>
chip_gen: v7x
topology: tpu7x:2x2x1
jax: 0.10.0
libtpu: 0.0.40
codegen_flags: <defaults>
</compile_context>

<pallas_src>
import functools

import jax
import jax.numpy as jnp
from jax import lax
from jax.experimental import pallas as pl
from jax.experimental.pallas import tpu as pltpu


def _ffm_kernel(num_fields, embed_dim, vocab, x_ref, w_ref, out_ref):
    """One grid step == one BB-row batch block.

    x_ref  : (BB, F)    int32 field indices
    w_ref  : (V, F*D)   f32; columns [i*D:(i+1)*D] are embedding table i
    out_ref: (BB, 1)    f32
    """
    F, D, V = num_fields, embed_dim, vocab
    bb = x_ref.shape[0]

    x_all = x_ref[...]                                          # (BB, F) int32
    w_cat = w_ref[...]                                          # (V, F*D) f32
    lane_iota = lax.broadcasted_iota(jnp.int32, (bb, V), 1)     # hoisted once

    # g[j][:, i*D:(i+1)*D] == E_i[x[:, j]]  (one MXU GEMM per field column)
    g = []
    for j in range(F):
        onehot = (lane_iota == x_all[:, j:j + 1]).astype(jnp.float32)  # (BB, V)
        g.append(jnp.dot(onehot, w_cat,
                         preferred_element_type=jnp.float32))          # (BB, F*D)

    # Pairwise field-aware interactions, accumulated on the VPU.
    acc = jnp.zeros((bb, D), jnp.float32)
    for i in range(F - 1):
        for j in range(i + 1, F):
            e_j_xi = g[i][:, j * D:(j + 1) * D]     # xs[j][:, i] = E_j[x[:, i]]
            e_i_xj = g[j][:, i * D:(i + 1) * D]     # xs[i][:, j] = E_i[x[:, j]]
            acc = acc + e_j_xi * e_i_xj

    # Single cross-lane reduction at the end -> (BB, 1)
    out_ref[...] = jnp.sum(acc, axis=1, keepdims=True).astype(out_ref.dtype)


def ffm_forward(x, weights, *, block_b=256):
    """Pallas-backed FFM forward.

    x       : (B, F) integer field indices
    weights : (F, V, D) float32 stacked embedding tables
    returns : (B, 1) float32
    """
    F, V, D = weights.shape
    B = x.shape[0]

    # Batch block: large (amortize per-step overhead), multiple of 8 sublanes.
    bb = min(block_b, max(8, pl.next_power_of_2(B)))
    bb = max(8, (bb // 8) * 8)
    b_pad = pl.cdiv(B, bb) * bb

    x_i32 = x.astype(jnp.int32)
    if b_pad != B:
        x_i32 = jnp.pad(x_i32, ((0, b_pad - B), (0, 0)))  # pad rows use index 0 (valid)

    # Concatenate the F tables along the feature axis: (V, F*D).
    w_cat = jnp.transpose(weights, (1, 0, 2)).reshape(V, F * D).astype(jnp.float32)

    kernel = functools.partial(_ffm_kernel, F, D, V)

    grid_spec = pltpu.PrefetchScalarGridSpec(
        num_scalar_prefetch=0,
        grid=(b_pad // bb,),
        in_specs=[
            pl.BlockSpec((bb, F), lambda b: (b, 0)),        # per-block indices
            pl.BlockSpec((V, F * D), lambda b: (0, 0)),     # weights stay resident
        ],
        out_specs=pl.BlockSpec((bb, 1), lambda b: (b, 0)),
    )

    out = pl.pallas_call(
        kernel,
        grid_spec=grid_spec,
        out_shape=jax.ShapeDtypeStruct((b_pad, 1), jnp.float32),
        compiler_params=pltpu.CompilerParams(
            dimension_semantics=("parallel",),
        ),
    )(x_i32, w_cat)
    return out[:B]


def ffm_reference(x, weights):
    """Plain-JAX reference mirroring the PyTorch forward."""
    F, V, D = weights.shape
    xs = [weights[i][x] for i in range(F)]                  # each (B, F, D)
    terms = []
    for i in range(F - 1):
        for j in range(i + 1, F):
            terms.append(xs[j][:, i] * xs[i][:, j])
    ix = jnp.stack(terms, axis=1)                           # (B, n_pairs, D)
    return jnp.sum(jnp.sum(ix, axis=1), axis=1, keepdims=True)


if __name__ == "__main__":
    B, num_fields, vocab, embed_dim = 2, 4, 100, 32

    key = jax.random.PRNGKey(0)
    k_x, k_w = jax.random.split(key)

    x = jax.random.randint(k_x, (B, num_fields), 0, vocab, dtype=jnp.int32)

    # xavier_uniform_ per table: bound = sqrt(6 / (fan_in + fan_out))
    bound = float(jnp.sqrt(6.0 / (vocab + embed_dim)))
    weights = jax.random.uniform(k_w, (num_fields, vocab, embed_dim),
                                 jnp.float32, -bound, bound)

    out = ffm_forward(x, weights)
    out = jax.block_until_ready(out)

    ref = ffm_reference(x, weights)
    assert out.shape == (B, 1)
    assert jnp.allclose(out, ref, atol=1e-4, rtol=1e-4)

    print("KERNEL_OK")
</pallas_src>

<mosaic_0001>
module attributes {stable_mosaic.version = 11 : i64} {
  func.func @_ffm_kernel(%arg0: i32, %arg1: memref<8x4xi32, #tpu.memory_space<vmem>>, %arg2: memref<100x128xf32, #tpu.memory_space<vmem>>, %arg3: memref<8x1xf32, #tpu.memory_space<vmem>>) attributes {dimension_semantics = [#tpu.dimension_semantics<parallel>], iteration_bounds = array<i64: 1>, scalar_prefetch = 0 : i64, scratch_operands = 0 : i64, tpu.core_type = #tpu.core_type<tc>, window_params = [{transform_indices = @transform_0, window_bounds = array<i64: 8, 4>}, {pipeline_mode = #tpu.pipeline_mode<synchronous>, transform_indices = @transform_1, window_bounds = array<i64: 100, 128>}, {transform_indices = @transform_2, window_bounds = array<i64: 8, 1>}]} {
    %c0 = arith.constant 0 : index
    %c0_0 = arith.constant 0 : index
    %0 = vector.load %arg1[%c0, %c0_0] : memref<8x4xi32, #tpu.memory_space<vmem>>, vector<8x4xi32>
    %c0_1 = arith.constant 0 : index
    %c0_2 = arith.constant 0 : index
    %1 = vector.load %arg2[%c0_1, %c0_2] : memref<100x128xf32, #tpu.memory_space<vmem>>, vector<100x128xf32>
    %2 = tpu.iota {dimensions = array<i32: 1>} : vector<8x100xi32>
    %3 = vector.extract_strided_slice %0 {offsets = [0, 0], sizes = [8, 1], strides = [1, 1]} : vector<8x4xi32> to vector<8x1xi32>
    %4 = vector.broadcast %3 : vector<8x1xi32> to vector<8x100xi32>
    %5 = arith.cmpi eq, %2, %4 : vector<8x100xi32>
    %6 = arith.extui %5 : vector<8x100xi1> to vector<8x100xi32>
    %7 = arith.sitofp %6 : vector<8x100xi32> to vector<8x100xf32>
    %cst = arith.constant dense<0.000000e+00> : vector<8x128xf32>
    %8 = tpu.matmul %7, %1, %cst {dimension_numbers = #tpu.dot_dimension_numbers<[1], [0], [0], [1], [0, 0, 1, 1], [], []>} : vector<8x100xf32>, vector<100x128xf32>, vector<8x128xf32> -> vector<8x128xf32>
    %9 = vector.extract_strided_slice %0 {offsets = [0, 1], sizes = [8, 1], strides = [1, 1]} : vector<8x4xi32> to vector<8x1xi32>
    %10 = vector.broadcast %9 : vector<8x1xi32> to vector<8x100xi32>
    %11 = arith.cmpi eq, %2, %10 : vector<8x100xi32>
    %12 = arith.extui %11 : vector<8x100xi1> to vector<8x100xi32>
    %13 = arith.sitofp %12 : vector<8x100xi32> to vector<8x100xf32>
    %cst_3 = arith.constant dense<0.000000e+00> : vector<8x128xf32>
    %14 = tpu.matmul %13, %1, %cst_3 {dimension_numbers = #tpu.dot_dimension_numbers<[1], [0], [0], [1], [0, 0, 1, 1], [], []>} : vector<8x100xf32>, vector<100x128xf32>, vector<8x128xf32> -> vector<8x128xf32>
    %15 = vector.extract_strided_slice %0 {offsets = [0, 2], sizes = [8, 1], strides = [1, 1]} : vector<8x4xi32> to vector<8x1xi32>
    %16 = vector.broadcast %15 : vector<8x1xi32> to vector<8x100xi32>
    %17 = arith.cmpi eq, %2, %16 : vector<8x100xi32>
    %18 = arith.extui %17 : vector<8x100xi1> to vector<8x100xi32>
    %19 = arith.sitofp %18 : vector<8x100xi32> to vector<8x100xf32>
    %cst_4 = arith.constant dense<0.000000e+00> : vector<8x128xf32>
    %20 = tpu.matmul %19, %1, %cst_4 {dimension_numbers = #tpu.dot_dimension_numbers<[1], [0], [0], [1], [0, 0, 1, 1], [], []>} : vector<8x100xf32>, vector<100x128xf32>, vector<8x128xf32> -> vector<8x128xf32>
    %21 = vector.extract_strided_slice %0 {offsets = [0, 3], sizes = [8, 1], strides = [1, 1]} : vector<8x4xi32> to vector<8x1xi32>
    %22 = vector.broadcast %21 : vector<8x1xi32> to vector<8x100xi32>
    %23 = arith.cmpi eq, %2, %22 : vector<8x100xi32>
    %24 = arith.extui %23 : vector<8x100xi1> to vector<8x100xi32>
    %25 = arith.sitofp %24 : vector<8x100xi32> to vector<8x100xf32>
    %cst_5 = arith.constant dense<0.000000e+00> : vector<8x128xf32>
    %26 = tpu.matmul %25, %1, %cst_5 {dimension_numbers = #tpu.dot_dimension_numbers<[1], [0], [0], [1], [0, 0, 1, 1], [], []>} : vector<8x100xf32>, vector<100x128xf32>, vector<8x128xf32> -> vector<8x128xf32>
    %cst_6 = arith.constant 0.000000e+00 : f32
    %27 = vector.broadcast %cst_6 : f32 to vector<8x32xf32>
    %28 = vector.extract_strided_slice %8 {offsets = [0, 32], sizes = [8, 32], strides = [1, 1]} : vector<8x128xf32> to vector<8x32xf32>
    %29 = vector.extract_strided_slice %14 {offsets = [0, 0], sizes = [8, 32], strides = [1, 1]} : vector<8x128xf32> to vector<8x32xf32>
    %30 = arith.mulf %28, %29 : vector<8x32xf32>
    %31 = arith.addf %27, %30 : vector<8x32xf32>
    %32 = vector.extract_strided_slice %8 {offsets = [0, 64], sizes = [8, 32], strides = [1, 1]} : vector<8x128xf32> to vector<8x32xf32>
    %33 = vector.extract_strided_slice %20 {offsets = [0, 0], sizes = [8, 32], strides = [1, 1]} : vector<8x128xf32> to vector<8x32xf32>
    %34 = arith.mulf %32, %33 : vector<8x32xf32>
    %35 = arith.addf %31, %34 : vector<8x32xf32>
    %36 = vector.extract_strided_slice %8 {offsets = [0, 96], sizes = [8, 32], strides = [1, 1]} : vector<8x128xf32> to vector<8x32xf32>
    %37 = vector.extract_strided_slice %26 {offsets = [0, 0], sizes = [8, 32], strides = [1, 1]} : vector<8x128xf32> to vector<8x32xf32>
    %38 = arith.mulf %36, %37 : vector<8x32xf32>
    %39 = arith.addf %35, %38 : vector<8x32xf32>
    %40 = vector.extract_strided_slice %14 {offsets = [0, 64], sizes = [8, 32], strides = [1, 1]} : vector<8x128xf32> to vector<8x32xf32>
    %41 = vector.extract_strided_slice %20 {offsets = [0, 32], sizes = [8, 32], strides = [1, 1]} : vector<8x128xf32> to vector<8x32xf32>
    %42 = arith.mulf %40, %41 : vector<8x32xf32>
    %43 = arith.addf %39, %42 : vector<8x32xf32>
    %44 = vector.extract_strided_slice %14 {offsets = [0, 96], sizes = [8, 32], strides = [1, 1]} : vector<8x128xf32> to vector<8x32xf32>
    %45 = vector.extract_strided_slice %26 {offsets = [0, 32], sizes = [8, 32], strides = [1, 1]} : vector<8x128xf32> to vector<8x32xf32>
    %46 = arith.mulf %44, %45 : vector<8x32xf32>
    %47 = arith.addf %43, %46 : vector<8x32xf32>
    %48 = vector.extract_strided_slice %20 {offsets = [0, 96], sizes = [8, 32], strides = [1, 1]} : vector<8x128xf32> to vector<8x32xf32>
    %49 = vector.extract_strided_slice %26 {offsets = [0, 64], sizes = [8, 32], strides = [1, 1]} : vector<8x128xf32> to vector<8x32xf32>
    %50 = arith.mulf %48, %49 : vector<8x32xf32>
    %51 = arith.addf %47, %50 : vector<8x32xf32>
    %cst_7 = arith.constant dense<0.000000e+00> : vector<8xf32>
    %52 = vector.multi_reduction <add>, %51, %cst_7 [1] : vector<8x32xf32> to vector<8xf32>
    %53 = vector.shape_cast %52 : vector<8xf32> to vector<8x1xf32>
    %c0_8 = arith.constant 0 : index
    %c0_9 = arith.constant 0 : index
    %54 = vector.load %arg3[%c0_8, %c0_9] : memref<8x1xf32, #tpu.memory_space<vmem>>, vector<8x1xf32>
    tpu.vector_store %arg3[%c0_8, %c0_9], %53 {strides = array<i32>} : memref<8x1xf32, #tpu.memory_space<vmem>>, vector<8x1xf32>,
    return
  }
  func.func @transform_0(%arg0: i32) -> (i32, i32) {
    %c0_i32 = arith.constant 0 : i32
    %c0_i32_0 = arith.constant 0 : i32
    return %arg0, %c0_i32 : i32, i32
  }
  func.func @transform_1(%arg0: i32) -> (i32, i32) {
    %c0_i32 = arith.constant 0 : i32
    %c0_i32_0 = arith.constant 0 : i32
    %c0_i32_1 = arith.constant 0 : i32
    return %c0_i32, %c0_i32_0 : i32, i32
  }
  func.func @transform_2(%arg0: i32) -> (i32, i32) {
    %c0_i32 = arith.constant 0 : i32
    %c0_i32_0 = arith.constant 0 : i32
    return %arg0, %c0_i32 : i32, i32
  }
}

</mosaic_0001>

<bundles_post_ra>
// kernel: tpu_custom_call.1
= control target key start
LH: loop header
LB: loop body
LE: loop exit
PB: predicated region body
PF: predicated region fallthrough
CT: control target
= control target key end

     0   :  { %7 = vsyncpa [#allocation3], 0  ;;  %s728_s9 = smov [#allocation2]   ;;  %s838_s0 = inlined_call_operand.vmem [shape: s32[8,4], index: 0, kind: input, shape index: {}]   ;;  %s839_s1 = inlined_call_operand.hbm [shape: f32[100,128], index: 1, kind: input, shape index: {}]   ;;  %s840_s2 = inlined_call_operand.vmem [shape: f32[8,1], index: 2, kind: output, shape index: {}]  }
   0x1   :  { %s15_s10 = sshll.u32 %s728_s9, 4  ;;  %s704_s13 = scalar_lea.hbm %s839_s1, 1664  ;;  %s16_s10 = int_to_ptr.vmem [resolvable:$true] %s15_s10 }
   0x2   :  { %p705_p0 = scmp.ne.s32.totalorder %s839_s1, %s704_s13  ;;  %p708_p1 = scmp.lt.u32.totalorder %s704_s13, %s839_s1 }
   0x4   :  { %p710_p2 = pnand %p708_p1, %p705_p0 }
   0x6   :  { %713 = shalt.err (!%p710_p2)
}
   0x7   :  { %s714_s18 = scalar_lea.vmem %s16_s10, 1664  ;;  %p719_p4 = scmp.lt.s32.totalorder %s16_s10, %s16_s10 }
   0x8   :  { %p715_p3 = scmp.ne.s32.totalorder %s16_s10, %s714_s18  ;;  %p720_p5 = scmp.lt.s32.totalorder %s714_s18, %s714_s18 }
   0xa   :  { %p721_p6 = por %p720_p5, %p719_p4 }
   0xc   :  { %p722_p7 = pnand %p721_p6, %p715_p3 }
   0xe   :  { %725 = shalt.err (!%p722_p7)
}
   0xf   :  { %s729_s19 = smov 128   ;;  %s730_s20 = smov 8  }
  0x10   :  { %21 = dma.hbm_to_vmem [thread:$0]  %s839_s1, 1664, %s16_s10, [#allocation3], %s729_s19, %s729_s19, %s730_s20  }
  0x11   :  { %726 = dma.done.wait [#allocation3], 1664  }
  0x12   :  { %727 = vsyncadd [#allocation3], 4294965632  ;;  %v731_v0 = vmov 0   ;;  %v732_v1 = vmov 2   ;;  %v733_v2 = vmov 0.0|0.0   ;;  %v25_v3 = vld [vmem:[%s838_s0] sm:$0xff]  ;;  %v39_v26 = vlaneseq }
  0x13   :  { %699 = vset.pattern.permute.xlu0 %v731_v0  ;;  %701 = vset.pattern.permute.xlu1 %v732_v1  ;;  %v26_v4 = vld [vmem:[#allocation2] sm:$0xff]  ;;  %v27_v5 = vld [vmem:[#allocation2 + $0x8] sm:$0xff]  ;;  %v28_v7 = vld [vmem:[#allocation2 + $0x10] sm:$0xff]  ;;  %vm734_vm0 = vmmov 0   ;;  %v735_v9 = vmov 0.0   ;;  %v736_v13 = vmov 1  }
  0x14   :  { %614 = vmatprep.subr.bf16.mxu0 %v733_v2  ;;  %632 = vmatprep.subr.bf16.mxu1 %v733_v2  ;;  %v773_v6 = vpack.c.bf16 %v27_v5, %v26_v4  ;;  %v29_v8 = vld [vmem:[#allocation2 + $0x18] sm:$0xff]  ;;  %v30_v11 = vld [vmem:[#allocation2 + $0x20] sm:$0xff]  ;;  %v31_v12 = vld [vmem:[#allocation2 + $0x28] sm:$0xff]  ;;  %v737_v14 = vmov 3   ;;  %vm51_vm1 = vcmask 1043456   ;;  %v40_v27 = vand.u32 127, %v39_v26 }
  0x15   :  { %42 = vperm.xlu0 %699, %v25_v3   ;;  %205 = vperm.xlu1 %701, %v25_v3   ;;  %v780_v10 = vpack.c.bf16 %v29_v8, %v28_v7  ;;  %v621_v15 = vpack.c.bf16 %v31_v12, %v30_v11  ;;  %v32_v16 = vld [vmem:[#allocation2 + $0x30] sm:$0xff]  ;;  %v33_v17 = vld [vmem:[#allocation2 + $0x38] sm:$0xff]  ;;  %v34_v19 = vld [vmem:[#allocation2 + $0x40] sm:$0xff]  ;;  %vm47_vm2 = vcmask 818176   ;;  %s738_s0 = smov 64   ;;  %s739_s1 = smov 32  }
  0x16   :  { %524 = vmatprep.mubr.msk.f32.mxu0 %vm734_vm0, %v735_v9  ;;  %553 = vmatprep.mubr.msk.f32.mxu1 %vm734_vm0, %v735_v9  ;;  %v624_v18 = vpack.c.bf16 %v33_v17, %v32_v16  ;;  %v35_v20 = vld [vmem:[#allocation2 + $0x48] sm:$0xff]  ;;  %v36_v22 = vld [vmem:[#allocation2 + $0x50] sm:$0xff]  ;;  %v37_v23 = vld [vmem:[#allocation2 + $0x58] sm:$0xff]  ;;  %s740_s25 = smov 96   ;;  %vm419_vm7 = vcmask 261120   ;;  %vm423_vm8 = vcmask 7168  }
  0x17   :  { %616 = vmatpush3.bf16.msra.mxu0 %v773_v6  ;;  %634 = vmatpush3.bf16.msra.mxu1 %v773_v6  ;;  %v627_v21 = vpack.c.bf16 %v35_v20, %v34_v19  ;;  %v630_v24 = vpack.c.bf16 %v37_v23, %v36_v22  ;;  %v38_v25 = vld [vmem:[#allocation2 + $0x60] sm:$0xf] }
  0x18   :  { %617 = vmatprep.subr.bf16.mxu0 %v733_v2  ;;  %635 = vmatprep.subr.bf16.mxu1 %v733_v2 }
  0x19   :  { %700 = vset.pattern.permute.xlu0 %v736_v13  ;;  %702 = vset.pattern.permute.xlu1 %v737_v14 }
  0x1a   :  { %126 = vperm.xlu0 %700, %v25_v3   ;;  %284 = vperm.xlu1 %702, %v25_v3  }
  0x1b   :  { %619 = vmatpush3.bf16.msra.mxu0 %v780_v10  ;;  %637 = vmatpush3.bf16.msra.mxu1 %v780_v10 }
  0x1c   :  { %620 = vmatprep.subr.bf16.mxu0 %v733_v2  ;;  %638 = vmatprep.subr.bf16.mxu1 %v733_v2 }
  0x1e   :  { %703 = vset.pattern.permute.xlu0 %v737_v14 }
  0x1f   :  { %622 = vmatpush3.bf16.msra.mxu0 %v621_v15  ;;  %640 = vmatpush3.bf16.msra.mxu1 %v621_v15 }
  0x20   :  { %623 = vmatprep.subr.bf16.mxu0 %v733_v2  ;;  %641 = vmatprep.subr.bf16.mxu1 %v733_v2 }
  0x23   :  { %625 = vmatpush3.bf16.msra.mxu0 %v624_v18  ;;  %643 = vmatpush3.bf16.msra.mxu1 %v624_v18 }
  0x24   :  { %626 = vmatprep.subr.bf16.mxu0 %v733_v2  ;;  %644 = vmatprep.subr.bf16.mxu1 %v733_v2 }
  0x27   :  { %628 = vmatpush3.bf16.msra.mxu0 %v627_v21  ;;  %646 = vmatpush3.bf16.msra.mxu1 %v627_v21 }
  0x28   :  { %629 = vmatprep.subr.bf16.mxu0 %v733_v2  ;;  %647 = vmatprep.subr.bf16.mxu1 %v733_v2 }
  0x2b   :  { %631 = vmatpush3.bf16.msra.mxu0 %v630_v24  ;;  %649 = vmatpush3.bf16.msra.mxu1 %v630_v24 }
  0x2c   :  { %522 = vmatprep.subr.mxu0 %v735_v9  ;;  %551 = vmatprep.subr.mxu1 %v735_v9 }
  0x2f   :  { %523 = vmatpush3.msk.msra.mxu0 %vm51_vm1, %v38_v25  ;;  %552 = vmatpush3.msk.msra.mxu1 %vm51_vm1, %v38_v25 }
  0x30   :  { %650 = vmatprep.subr.bf16.mxu0 %v733_v2  ;;  %668 = vmatprep.subr.bf16.mxu1 %v733_v2 }
  0x94   :  { %v43_v28 = vpop.permute.xlu0 %42  ;;  %v206_v32 = vpop.permute.xlu1 %205 }
  0x95   :  { %vm44_vm3 = vcmp.eq.s32.totalorder %v40_v27, %v43_v28  ;;  %vm207_vm5 = vcmp.eq.s32.totalorder %v40_v27, %v206_v32 }
  0x96   :  { %v430_v29 = vsel %vm44_vm3, 1.0, %v735_v9  ;;  %v436_v34 = vsel %vm207_vm5, 1.0, %v735_v9 }
  0x97   :  { %525 = vmatmul.mubr.msk.f32.vlgmr.msra.gmra.mrb[0].mxu0 %vm47_vm2, %v430_v29 }
  0x98   :  { %652 = vmatpush3.bf16.msra.mxu0 %v773_v6  ;;  %582 = vmatprep.mubr.msk.f32.mxu0 %vm734_vm0, %v735_v9 }
  0x99   :  { %v127_v30 = vpop.permute.xlu0 %126  ;;  %653 = vmatprep.subr.bf16.mxu0 %v733_v2  ;;  %v285_v33 = vpop.permute.xlu1 %284 }
  0x9a   :  { %vm128_vm4 = vcmp.eq.s32.totalorder %v40_v27, %v127_v30  ;;  %vm286_vm6 = vcmp.eq.s32.totalorder %v40_v27, %v285_v33 }
  0x9b   :  { %v433_v31 = vsel %vm128_vm4, 1.0, %v735_v9  ;;  %v439_v35 = vsel %vm286_vm6, 1.0, %v735_v9 }
  0x9c   :  { %655 = vmatpush3.bf16.msra.mxu0 %v780_v10  ;;  %554 = vmatmul.mubr.msk.f32.vlgmr.msra.gmra.mrb[0].mxu1 %vm47_vm2, %v433_v31 }
  0x9d   :  { %670 = vmatpush3.bf16.msra.mxu1 %v773_v6  ;;  %656 = vmatprep.subr.bf16.mxu0 %v733_v2 }
  0x9e   :  { %671 = vmatprep.subr.bf16.mxu1 %v733_v2  ;;  %611 = vmatprep.mubr.msk.f32.mxu1 %vm734_vm0, %v735_v9 }
  0xa0   :  { %658 = vmatpush3.bf16.msra.mxu0 %v621_v15 }
  0xa1   :  { %673 = vmatpush3.bf16.msra.mxu1 %v780_v10  ;;  %659 = vmatprep.subr.bf16.mxu0 %v733_v2 }
  0xa2   :  { %674 = vmatprep.subr.bf16.mxu1 %v733_v2 }
  0xa4   :  { %661 = vmatpush3.bf16.msra.mxu0 %v624_v18 }
  0xa5   :  { %676 = vmatpush3.bf16.msra.mxu1 %v621_v15  ;;  %662 = vmatprep.subr.bf16.mxu0 %v733_v2 }
  0xa6   :  { %677 = vmatprep.subr.bf16.mxu1 %v733_v2 }
  0xa8   :  { %664 = vmatpush3.bf16.msra.mxu0 %v627_v21 }
  0xa9   :  { %679 = vmatpush3.bf16.msra.mxu1 %v624_v18  ;;  %665 = vmatprep.subr.bf16.mxu0 %v733_v2 }
  0xaa   :  { %680 = vmatprep.subr.bf16.mxu1 %v733_v2 }
  0xac   :  { %667 = vmatpush3.bf16.msra.mxu0 %v630_v24 }
  0xad   :  { %682 = vmatpush3.bf16.msra.mxu1 %v627_v21  ;;  %580 = vmatprep.subr.mxu0 %v735_v9 }
  0xae   :  { %683 = vmatprep.subr.bf16.mxu1 %v733_v2 }
  0xb0   :  { %581 = vmatpush3.msk.msra.mxu0 %vm51_vm1, %v38_v25 }
  0xb1   :  { %583 = vmatmul.mubr.msk.f32.vlgmr.msra.gmra.mrb[2].mxu0 %vm47_vm2, %v436_v34  ;;  %685 = vmatpush3.bf16.msra.mxu1 %v630_v24 }
  0xb2   :  { %609 = vmatprep.subr.mxu1 %v735_v9 }
  0xb5   :  { %610 = vmatpush3.msk.msra.mxu1 %vm51_vm1, %v38_v25 }
  0xb6   :  { %612 = vmatmul.mubr.msk.f32.vlgmr.msra.gmra.mrb[2].mxu1 %vm47_vm2, %v439_v35 }
 0x16a   :  { %v121_v36 = vpop.f32.mrb[0].mxu0 }
 0x16b   :  { %v526_v37 = vpop.f32.mrb[1].mxu0 }
 0x16f   :  { %v200_v38 = vpop.f32.mrb[0].mxu1 }
 0x170   :  { %v555_v39 = vpop.f32.mrb[1].mxu1 }
 0x184   :  { %v279_v40 = vpop.f32.mrb[2].mxu0 }
 0x185   :  { %369 = vrot.lane.b32.xlu1 %v279_v40, %s738_s0  ;;  %v584_v41 = vpop.f32.mrb[3].mxu0 }
 0x189   :  { %388 = vrot.lane.b32.xlu1 %v279_v40, %s739_s1  ;;  %v358_v42 = vpop.f32.mrb[2].mxu1 }
 0x18a   :  { %379 = vrot.lane.b32.xlu0 %v358_v42, %s740_s25  ;;  %v613_v43 = vpop.f32.mrb[3].mxu1 }
 0x18d   :  { %406 = vrot.lane.b32.xlu1 %v358_v42, %s739_s1 }
 0x18e   :  { %397 = vrot.lane.b32.xlu0 %v358_v42, %s738_s0 }
 0x192   :  { %363 = vrot.lane.b32.xlu0 %v200_v38, %s739_s1 }
 0x1f7   :  { %v370_v44 = vpop.permute.xlu1 %369 }
 0x1f8   :  { %v372_v45 = vmul.f32 %v370_v44, %v121_v36 }
 0x1fa   :  { %374 = vrot.lane.b32.xlu1 %v372_v45, %s740_s25 }
 0x1fb   :  { %v389_v46 = vpop.permute.xlu1 %388 }
 0x1fc   :  { %v391_v47 = vmul.f32 %v389_v46, %v200_v38  ;;  %v380_v48 = vpop.permute.xlu0 %379 }
 0x1fd   :  { %v382_v49 = vmul.f32 %v380_v48, %v121_v36 }
 0x1fe   :  { %393 = vrot.lane.b32.xlu1 %v391_v47, %s740_s25 }
 0x1ff   :  { %v407_v50 = vpop.permute.xlu1 %406  ;;  %384 = vrot.lane.b32.xlu0 %v382_v49, %s738_s0 }
 0x200   :  { %v409_v51 = vmul.f32 %v407_v50, %v279_v40  ;;  %v398_v52 = vpop.permute.xlu0 %397 }
 0x201   :  { %v400_v53 = vmul.f32 %v398_v52, %v200_v38 }
 0x202   :  { %411 = vrot.lane.b32.xlu1 %v409_v51, %s738_s0 }
 0x203   :  { %402 = vrot.lane.b32.xlu0 %v400_v53, %s738_s0 }
 0x204   :  { %v364_v54 = vpop.permute.xlu0 %363 }
 0x205   :  { %v366_v56 = vmul.f32 %v364_v54, %v121_v36 }
 0x26c   :  { %v375_v55 = vpop.permute.xlu1 %374 }
 0x26d   :  { %v377_v57 = vadd.f32 %v375_v55, %v366_v56 }
 0x270   :  { %v394_v58 = vpop.permute.xlu1 %393 }
 0x271   :  { %v385_v59 = vpop.permute.xlu0 %384 }
 0x272   :  { %v387_v60 = vadd.f32 %v385_v59, %v377_v57 }
 0x274   :  { %v396_v61 = vadd.f32 %v394_v58, %v387_v60  ;;  %v412_v0 = vpop.permute.xlu1 %411 }
 0x275   :  { %v403_v62 = vpop.permute.xlu0 %402 }
 0x276   :  { %v405_v63 = vadd.f32 %v403_v62, %v396_v61 }
 0x278   :  { %v414_v1 = vadd.f32 %v412_v0, %v405_v63 }
 0x27a   :  { %416 = vrot.lane.b32.xlu0 %v414_v1, %s740_s25 }
 0x2ec   :  { %v417_v2 = vpop.permute.xlu0 %416 }
 0x2ed   :  { %v420_v3 = vsel %vm419_vm7, %v417_v2, 0.0 }
 0x2ee   :  { %421 = vadd.xlane.f32.xlu1 %v420_v3 }
 0x37b   :  { %v422_v4 = vpop.xlane.xlu1 %421 }
 0x37c   :  { %424 = vst.msk [vmem:[%s840_s2] sm:$0xff] %vm423_vm8, %v422_v4 }
 0x37d   :  { %429 = vsyncpa [#allocation3], 1 }

</bundles_post_ra>
